<compile_context>
chip_gen: v7x
topology: tpu7x:2x2x1
jax: 0.10.0
libtpu: 0.0.40
codegen_flags: <defaults>
</compile_context>

<pallas_src>
from functools import partial

import jax
import jax.numpy as jnp
from jax.experimental import pallas as pl
from jax.experimental.pallas import tpu as pltpu
import numpy as np


def rope_kernel(cos_ref, sin_even_ref, sin_odd_ref, x_ref, o_ref):
    # cos_ref / sin_even_ref / sin_odd_ref : (TS, H*D) float32 tables
    #   sin_even[j] = -sin(freq[j]) on even lanes, 0 on odd lanes
    #   sin_odd[j]  =  sin(freq[j]) on odd lanes,  0 on even lanes
    # x_ref / o_ref : (1, TS, H*D) in the tensor's native dtype
    x = x_ref[0].astype(jnp.float32)                 # (TS, HD)
    hd = x.shape[-1]
    # rotate_half: out[2i] = -x[2i+1], out[2i+1] = x[2i]
    x_next = pltpu.roll(x, shift=hd - 1, axis=1)     # out[j] = x[j+1] (wrap lanes masked by 0-table)
    x_prev = pltpu.roll(x, shift=1, axis=1)          # out[j] = x[j-1] (wrap lanes masked by 0-table)
    out = x * cos_ref[...] + x_next * sin_even_ref[...] + x_prev * sin_odd_ref[...]
    o_ref[0] = out.astype(o_ref.dtype)


def _pick_seq_tile(S, HD, itemsize, target_bytes=2 << 20):
    """Largest aligned divisor of S whose (TS, HD) block is <= target_bytes."""
    if S * HD * itemsize <= target_bytes:
        return S
    align = 8 * (4 // itemsize) if itemsize in (1, 2, 4) else 8   # f32:8 bf16:16 i8:32
    cand = (min(S, max(align, target_bytes // (HD * itemsize))) // align) * align
    while cand >= align:
        if S % cand == 0:
            return cand
        cand -= align
    return S          # no aligned divisor; fall back to full-extent block (escape hatch)


@partial(jax.jit, static_argnames=("interpolate_factor", "offset"))
def rotate_queries_or_keys(t, inv_freq, *, interpolate_factor=1.0, offset=0):
    """Pallas equivalent of RotaryEmbedding.rotate_queries_or_keys(t)."""
    B, H, S, D = t.shape
    assert D % 2 == 0, "head dim must be even for rotate_half"
    assert inv_freq.shape[0] * 2 == D, "full feature dim is rotated (rot_dim == D)"
    HD = H * D

    # ---- tiny parameter prep, done once in plain JAX ----------------------
    pos = (jnp.arange(S, dtype=jnp.float32) + offset) / interpolate_factor
    freqs = pos[:, None] * inv_freq[None, :].astype(jnp.float32)    # (S, D//2)
    freqs = jnp.repeat(freqs, 2, axis=-1)                           # (S, D) [f0,f0,f1,f1,...]
    cos = jnp.cos(freqs)
    sin = jnp.sin(freqs)
    even = (jnp.arange(D) % 2) == 0
    sin_even = jnp.where(even, -sin, 0.0)    # multiplies x[j+1] at even j
    sin_odd = jnp.where(even, 0.0, sin)      # multiplies x[j-1] at odd j
    # identical tables for every head; tile along the packed lane axis
    cos_t = jnp.tile(cos, (1, H))            # (S, HD)
    sin_even_t = jnp.tile(sin_even, (1, H))  # (S, HD)
    sin_odd_t = jnp.tile(sin_odd, (1, H))    # (S, HD)

    # heads packed along lanes: (B, H, S, D) -> (B, S, H*D)
    x = jnp.transpose(t, (0, 2, 1, 3)).reshape(B, S, HD)

    ts = _pick_seq_tile(S, HD, jnp.dtype(t.dtype).itemsize)
    grid = (S // ts, B)                      # batch fastest: tables stay resident

    out = pl.pallas_call(
        rope_kernel,
        out_shape=jax.ShapeDtypeStruct((B, S, HD), t.dtype),
        grid=grid,
        in_specs=[
            pl.BlockSpec((ts, HD), lambda s, b: (s, 0)),
            pl.BlockSpec((ts, HD), lambda s, b: (s, 0)),
            pl.BlockSpec((ts, HD), lambda s, b: (s, 0)),
            pl.BlockSpec((1, ts, HD), lambda s, b: (b, s, 0)),
        ],
        out_specs=pl.BlockSpec((1, ts, HD), lambda s, b: (b, s, 0)),
        input_output_aliases={3: 0},         # rotate in place (packed buffer)
        compiler_params=pltpu.CompilerParams(
            dimension_semantics=("parallel", "parallel"),
            vmem_limit_bytes=48 * 1024 * 1024),
    )(cos_t, sin_even_t, sin_odd_t, x)

    return out.reshape(B, S, H, D).transpose(0, 2, 1, 3)


def reference_rope(t, inv_freq, *, interpolate_factor=1.0, offset=0):
    """Pure-JAX reference mirroring the PyTorch module semantics."""
    S = t.shape[-2]
    pos = (jnp.arange(S, dtype=jnp.float32) + offset) / interpolate_factor
    freqs = pos[:, None] * inv_freq[None, :].astype(jnp.float32)    # (S, D/2)
    freqs = jnp.repeat(freqs, 2, axis=-1)                           # (S, D)
    cos = jnp.cos(freqs)
    sin = jnp.sin(freqs)
    tf = t.astype(jnp.float32)
    x1 = tf[..., 0::2]
    x2 = tf[..., 1::2]
    rot = jnp.stack((-x2, x1), axis=-1).reshape(t.shape)            # rotate_half
    return (tf * cos + rot * sin).astype(t.dtype)


if __name__ == "__main__":
    # Module params (deterministic, freqs_for='lang')
    dim = 32
    theta = 10000.0
    inv_freq = 1.0 / (theta ** (jnp.arange(0, dim, 2, dtype=jnp.float32) / dim))

    # Inputs: (batch, heads, seq, dim) -> packed lane dim H*D = 128 (lane-dense)
    B, H, S = 2, 4, 8
    key = jax.random.PRNGKey(0)
    t = jax.random.normal(key, (B, H, S, dim), dtype=jnp.float32)

    out = jax.block_until_ready(rotate_queries_or_keys(t, inv_freq))
    ref = reference_rope(t, inv_freq)
    np.testing.assert_allclose(np.asarray(out), np.asarray(ref),
                               rtol=1e-5, atol=1e-5)

    # Native bf16 I/O path (f32 compute inside the kernel).
    t_bf16 = t.astype(jnp.bfloat16)
    out_bf16 = jax.block_until_ready(rotate_queries_or_keys(t_bf16, inv_freq))
    ref_bf16 = reference_rope(t_bf16, inv_freq)
    np.testing.assert_allclose(np.asarray(out_bf16.astype(jnp.float32)),
                               np.asarray(ref_bf16.astype(jnp.float32)),
                               rtol=0.0, atol=0.06)

    # TODO(synk): xpos scaling (use_xpos=True) and partial rotation
    # (start_index > 0 / rot_dim < head_dim) are not implemented.
    print("KERNEL_OK")
</pallas_src>

<mosaic_0001>
module attributes {stable_mosaic.version = 11 : i64} {
  func.func @rope_kernel(%arg0: i32, %arg1: i32, %arg2: memref<8x128xf32, #tpu.memory_space<vmem>>, %arg3: memref<8x128xf32, #tpu.memory_space<vmem>>, %arg4: memref<8x128xf32, #tpu.memory_space<vmem>>, %arg5: memref<1x8x128xf32, #tpu.memory_space<vmem>>, %arg6: memref<1x8x128xf32, #tpu.memory_space<vmem>>) attributes {dimension_semantics = [#tpu.dimension_semantics<parallel>, #tpu.dimension_semantics<parallel>], iteration_bounds = array<i64: 1, 2>, scalar_prefetch = 0 : i64, scratch_operands = 0 : i64, tpu.core_type = #tpu.core_type<tc>, window_params = [{transform_indices = @transform_0, window_bounds = array<i64: 8, 128>}, {transform_indices = @transform_1, window_bounds = array<i64: 8, 128>}, {transform_indices = @transform_2, window_bounds = array<i64: 8, 128>}, {transform_indices = @transform_3, window_bounds = array<i64: 1, 8, 128>}, {transform_indices = @transform_4, window_bounds = array<i64: 1, 8, 128>}]} {
    %c0 = arith.constant 0 : index
    %c0_0 = arith.constant 0 : index
    %c0_1 = arith.constant 0 : index
    %0 = vector.load %arg5[%c0, %c0_0, %c0_1] : memref<1x8x128xf32, #tpu.memory_space<vmem>>, vector<1x8x128xf32>
    %1 = vector.shape_cast %0 : vector<1x8x128xf32> to vector<8x128xf32>
    %c127_i32 = arith.constant 127 : i32
    %2 = tpu.dynamic_rotate %1 by %c127_i32 dim 1 : vector<8x128xf32>, i32 -> vector<8x128xf32>
    %c1_i32 = arith.constant 1 : i32
    %3 = tpu.dynamic_rotate %1 by %c1_i32 dim 1 : vector<8x128xf32>, i32 -> vector<8x128xf32>
    %c0_2 = arith.constant 0 : index
    %c0_3 = arith.constant 0 : index
    %4 = vector.load %arg2[%c0_2, %c0_3] : memref<8x128xf32, #tpu.memory_space<vmem>>, vector<8x128xf32>
    %5 = arith.mulf %1, %4 : vector<8x128xf32>
    %c0_4 = arith.constant 0 : index
    %c0_5 = arith.constant 0 : index
    %6 = vector.load %arg3[%c0_4, %c0_5] : memref<8x128xf32, #tpu.memory_space<vmem>>, vector<8x128xf32>
    %7 = arith.mulf %2, %6 : vector<8x128xf32>
    %8 = arith.addf %5, %7 : vector<8x128xf32>
    %c0_6 = arith.constant 0 : index
    %c0_7 = arith.constant 0 : index
    %9 = vector.load %arg4[%c0_6, %c0_7] : memref<8x128xf32, #tpu.memory_space<vmem>>, vector<8x128xf32>
    %10 = arith.mulf %3, %9 : vector<8x128xf32>
    %11 = arith.addf %8, %10 : vector<8x128xf32>
    %c0_8 = arith.constant 0 : index
    %c0_9 = arith.constant 0 : index
    %c0_10 = arith.constant 0 : index
    %12 = vector.load %arg6[%c0_8, %c0_9, %c0_10] : memref<1x8x128xf32, #tpu.memory_space<vmem>>, vector<1x8x128xf32>
    %13 = vector.shape_cast %12 : vector<1x8x128xf32> to vector<8x128xf32>
    %14 = vector.shape_cast %11 : vector<8x128xf32> to vector<1x8x128xf32>
    tpu.vector_store %arg6[%c0_8, %c0_9, %c0_10], %14 {strides = array<i32>} : memref<1x8x128xf32, #tpu.memory_space<vmem>>, vector<1x8x128xf32>,
    return
  }
  func.func @transform_0(%arg0: i32, %arg1: i32) -> (i32, i32) {
    %c0_i32 = arith.constant 0 : i32
    %c0_i32_0 = arith.constant 0 : i32
    return %arg0, %c0_i32 : i32, i32
  }
  func.func @transform_1(%arg0: i32, %arg1: i32) -> (i32, i32) {
    %c0_i32 = arith.constant 0 : i32
    %c0_i32_0 = arith.constant 0 : i32
    return %arg0, %c0_i32 : i32, i32
  }
  func.func @transform_2(%arg0: i32, %arg1: i32) -> (i32, i32) {
    %c0_i32 = arith.constant 0 : i32
    %c0_i32_0 = arith.constant 0 : i32
    return %arg0, %c0_i32 : i32, i32
  }
  func.func @transform_3(%arg0: i32, %arg1: i32) -> (i32, i32, i32) {
    %c0_i32 = arith.constant 0 : i32
    %c0_i32_0 = arith.constant 0 : i32
    return %arg1, %arg0, %c0_i32 : i32, i32, i32
  }
  func.func @transform_4(%arg0: i32, %arg1: i32) -> (i32, i32, i32) {
    %c0_i32 = arith.constant 0 : i32
    %c0_i32_0 = arith.constant 0 : i32
    return %arg1, %arg0, %c0_i32 : i32, i32, i32
  }
}

</mosaic_0001>

<bundles_post_ra>
// kernel: tile.24
= control target key start
LH: loop header
LB: loop body
LE: loop exit
PB: predicated region body
PF: predicated region fallthrough
CT: control target
= control target key end

     0   :  { %vm42_vm0 = vcmask 1047556   ;;  %vm44_vm1 = vcmask 261120   ;;  %s93_s22 = smov 32   ;;  %s94_s25 = smov 64   ;;  %vm54_vm2 = vcmask 1048320   ;;  %vm64_vm3 = vcmask 785920   ;;  %s146_s0 = inlined_call_operand.vmem [shape: f32[8,4,32], index: 0, kind: input, shape index: {}]   ;;  %s147_s1 = inlined_call_operand.vmem [shape: f32[8,128], index: 1, kind: output, shape index: {}]  }
   0x1   :  { %v82_v0 = vld [vmem:[%s146_s0 + $0x1c] sm:$0xf]  ;;  %v83_v1 = vld [vmem:[%s146_s0 + $0x18] sm:$0xf]  ;;  %v84_v2 = vld [vmem:[%s146_s0 + $0x14] sm:$0xf] }
   0x2   :  { %8 = vst [vmem:[#allocation0 + $0x38] sm:$0xf] %v82_v0  ;;  %13 = vst [vmem:[#allocation0 + $0x30] sm:$0xf] %v83_v1  ;;  %v85_v3 = vld [vmem:[%s146_s0 + $0x10] sm:$0xf] }
   0x3   :  { %18 = vst [vmem:[#allocation0 + $0x28] sm:$0xf] %v84_v2  ;;  %v86_v4 = vld [vmem:[%s146_s0 + $0xc] sm:$0xf]  ;;  %v87_v5 = vld [vmem:[%s146_s0 + $0x8] sm:$0xf] }
   0x4   :  { %23 = vst [vmem:[#allocation0 + $0x20] sm:$0xf] %v85_v3  ;;  %28 = vst [vmem:[#allocation0 + $0x18] sm:$0xf] %v86_v4  ;;  %v88_v6 = vld [vmem:[%s146_s0 + $0x4] sm:$0xf] }
   0x5   :  { %33 = vst [vmem:[#allocation0 + $0x10] sm:$0xf] %v87_v5  ;;  %v38_v7 = vld [vmem:[%s146_s0] sm:$0xf]  ;;  %37 = vst [vmem:[#allocation0 + $0x8] sm:$0xf] %v88_v6 }
   0x6   :  { %39 = vst [vmem:[#allocation0] sm:$0xf] %v38_v7  ;;  %s92_s0 = smov 96   ;;  %vm74_vm4 = vcmask 523520  }
   0xb   :  { %v49_v8 = vld [vmem:[#allocation0 + $0x3] ss:$8 sm:$0xf0]   ;;  %v59_v9 = vld [vmem:[#allocation0 + $0x2] ss:$8 sm:$0xf0]  }
   0xc   :  { %v69_v14 = vld [vmem:[#allocation0 + $0x1] ss:$8 sm:$0xf0]   ;;  %v41_v17 = vld [vmem:[#allocation0] ss:$8 sm:$0xf0]  }
   0xd   :  { %v47_v10 = vld [vmem:[#allocation0 + $0x3] ss:$8 sm:$0xf]   ;;  %v57_v11 = vld [vmem:[#allocation0 + $0x2] ss:$8 sm:$0xf]  }
   0xe   :  { %v51_v12 = vsel %vm42_vm0, %v49_v8, %v47_v10  ;;  %v67_v13 = vld [vmem:[#allocation0 + $0x1] ss:$8 sm:$0xf]   ;;  %v40_v16 = vld [vmem:[#allocation0] ss:$8 sm:$0xf]   ;;  %v61_v18 = vsel %vm42_vm0, %v59_v9, %v57_v11 }
   0xf   :  { %52 = vrot.lane.b32.xlu0 %v51_v12, %s92_s0  ;;  %v71_v15 = vsel %vm42_vm0, %v69_v14, %v67_v13  ;;  %v43_v19 = vsel %vm42_vm0, %v41_v17, %v40_v16 }
  0x10   :  { %72 = vrot.lane.b32.xlu1 %v71_v15, %s93_s22  ;;  %45 = vst.msk [vmem:[%s147_s1] sm:$0xff] %vm44_vm1, %v43_v19  }
  0x13   :  { %62 = vrot.lane.b32.xlu0 %v61_v18, %s94_s25 }
  0x81   :  { %v53_v20 = vpop.permute.xlu0 %52  }
  0x82   :  { %55 = vst.msk [vmem:[%s147_s1] sm:$0xff] %vm54_vm2, %v53_v20   ;;  %v73_v21 = vpop.permute.xlu1 %72  }
  0x85   :  { %v63_v22 = vpop.permute.xlu0 %62  }
  0x86   :  { %65 = vst.msk [vmem:[%s147_s1] sm:$0xff] %vm64_vm3, %v63_v22  }
  0x87   :  { %75 = vst.msk [vmem:[%s147_s1] sm:$0xff] %vm74_vm4, %v73_v21  }

// kernel: rotate_queries_or_keys.1
= control target key start
LH: loop header
LB: loop body
LE: loop exit
PB: predicated region body
PF: predicated region fallthrough
CT: control target
= control target key end

     0   :  { %s498_s15 = smov 0   ;;  %s500_s16 = smov 0   ;;  %s537_s0 = inlined_call_operand.vmem [shape: f32[8,128], index: 0, kind: input, shape index: {}]   ;;  %s538_s1 = inlined_call_operand.vmem [shape: f32[8,128], index: 1, kind: input, shape index: {}]   ;;  %s539_s2 = inlined_call_operand.vmem [shape: f32[8,128], index: 2, kind: input, shape index: {}]   ;;  %s540_s3 = inlined_call_operand.vmem [shape: f32[2,8,128], index: 3, kind: input, shape index: {}, may-alias: {3,4}]   ;;  %s541_s4 = inlined_call_operand.vmem [shape: f32[2,8,128], index: 4, kind: output, shape index: {}, may-alias: {3,4}]  }
   0x1   :  { %s502_s17 = smov 0  }
   0x2 LB: > { %s23_s18 = sadd.s32 1, %s465_s16  ;;  %p416_p0 = scmp.ge.s32.totalorder %s469_s17, 1  ;;  %s469_s17 = sphi %s502_s17, %s14_s17   ;;  %s465_s16 = sphi %s500_s16, %s543_s16   ;;  %s461_s15 = sphi %s498_s15, %s542_s15  }
   0x3   : > { %p24_p1 = scmp.ge.s32.totalorder %s23_s18, 2  ;;  %p207_p2 = scmp.lt.s32.totalorder %s469_s17, 3 }
   0x5   : > { %s545_s18 = smov (%p24_p1, %s23_s18), 0  ;;  %p208_p3 = pnand %p416_p0, %p207_p2 }
   0x6   : > { %p261_p4 = scmp.lt.s32.totalorder (!%p208_p3), %s461_s15, 1  ;;  %s471_s23 = smov (!%p208_p3), 127   ;;  %v280_v1 = vld [vmem:[%s537_s0] sm:$0xff] (!%p208_p3) }
   0x7   : > { %211 = sbr.rel (%p208_p3) target bundleno = 142 (0x8e), region = 36  ;;  %s472_s24 = smov (!%p208_p3), 1   ;;  %v282_v2 = vld [vmem:[%s538_s1] sm:$0xff] (!%p208_p3) }
   0x8   : > { %v285_v6 = vld [vmem:[%s539_s2] sm:$0xff] (!%p208_p3) }
   0xe   : > { %s547_s15 = smov (!%p261_p4, %s461_s15), 1 }
   0xf   : > { %s417_s19 = sshll.u32 %s547_s15, 3 }
  0x10   : > { %s267_s22 = scalar_lea.vmem %s540_s3, %s417_s19  ;;  %s274_s7 = scalar_lea.vmem %s541_s4, %s417_s19 }
  0x11   : > { %v275_v0 = vld [vmem:[%s267_s22] sm:$0xff] }
  0x12   : > { %276 = vrot.lane.b32.xlu0 %v275_v0, %s471_s23  ;;  %v281_v4 = vmul.f32 %v280_v1, %v275_v0 }
  0x16   : > { %278 = vrot.lane.b32.xlu0 %v275_v0, %s472_s24 }
  0x84   : > { %v277_v3 = vpop.permute.xlu0 %276 }
  0x85   : > { %v283_v5 = vmul.f32 %v282_v2, %v277_v3 }
  0x87   : > { %v284_v8 = vadd.f32 %v283_v5, %v281_v4 }
  0x88   : > { %v279_v7 = vpop.permute.xlu0 %278 }
  0x89   : > { %v286_v9 = vmul.f32 %v285_v6, %v279_v7 }
  0x8b   : > { %v287_v10 = vadd.f32 %v286_v9, %v284_v8 }
  0x8d   : > { %288 = vst [vmem:[%s274_s7] sm:$0xff] %v287_v10 }
  0x8e PF: > { %s14_s17 = sadd.s32 1, %s469_s17   ;;  %s542_s15 = smov %s465_s16 }
  0x8f   : > { %p11_p5 = scmp.ge.s32.totalorder %s14_s17, 4   ;;  %s543_s16 = smov %s545_s18 }
  0x91   :  { %13 = sbr.rel (!%p11_p5) target bundleno = 2 (0x2), region = 75 }

</bundles_post_ra>
